<compile_context>
chip_gen: v7x
topology: tpu7x:2x2x1
jax: 0.10.0
libtpu: 0.0.40
codegen_flags: <defaults>
</compile_context>

<pallas_src>
import jax
import jax.numpy as jnp
from jax.experimental import pallas as pl
from jax.experimental.pallas import tpu as pltpu

# ---------------- model hyper-parameters (small, consistent with forward) ----
VOCAB_SIZE = 100
EMB_DIM    = 32          # args.embed_dim
HIDDEN     = 32          # args.hidden_dim
CLASS_NUM  = 2
EVENT_NUM  = 5           # args.event_num
FILTER_NUM = 20
WINDOW_SIZES = (1, 2, 3, 4)
NUM_WINDOWS  = len(WINDOW_SIZES)
MAX_K        = max(WINDOW_SIZES)
F_PAD        = 32                      # 20 real filters + 12 zero lanes / window
LANES        = NUM_WINDOWS * F_PAD     # 128 = lane width (= MAX_K * EMB_DIM)
DOM_OFF      = 8                       # domain logits/probs live in lanes [8, 13)
NEG_INF      = -1e30                   # finite "masked" logit (exp underflows to 0)
BATCH   = 2
SEQ_LEN = 8
MAX_BATCH_BLOCK = 512                  # rows per grid step at real batch sizes


def _round_up(x, m):
    return ((x + m - 1) // m) * m


def _masked_softmax(z, mask):
    """Lane-group softmax with exact divide; masked lanes come out as exact 0."""
    z = jnp.where(mask, z, NEG_INF)
    m = jnp.max(z, axis=-1, keepdims=True)
    e = jnp.exp(z - m)
    return e / jnp.sum(e, axis=-1, keepdims=True)


def cnn_fusion_kernel(win_ref, vmask_ref,
                      wconv_ref, bconv_ref,
                      wfc_ref, bfc_ref,
                      whead_ref, bhead_ref,
                      out_ref):
    Lp = vmask_ref.shape[0]                              # padded seq length (mult of 8)
    windows = win_ref[...]                               # (bb*Lp, 128) bf16, MXU-ready

    # All four Conv2d(1,20,(K,E)) in ONE MXU matmul vs. the packed (128,128) slab.
    conv = jnp.dot(windows, wconv_ref[...], preferred_element_type=jnp.float32)
    conv = jnp.maximum(conv + bconv_ref[...], 0.0)       # F.relu, f32
    bb = conv.shape[0] // Lp
    # Mask positions past each window's valid range (post-ReLU -> 0 is neutral for
    # the max since valid values >= 0), then max-pool over the sequence axis.
    conv = conv.reshape(bb, Lp, LANES) * vmask_ref[...][None]
    pooled = jnp.max(conv, axis=1)                       # (bb, 128): 4 x (20 real + 12 pad)

    # fc1 + ReLU; packed weight has zero rows for pad lanes, hidden in lanes [0,32).
    feat = jnp.dot(pooled.astype(jnp.bfloat16), wfc_ref[...],
                   preferred_element_type=jnp.float32)
    feat = jnp.maximum(feat + bfc_ref[...], 0.0)         # (bb, 128)

    # Fused heads (single matmul): class logits in lanes [0,2), domain logits
    # (d_fc2 o LeakyReLU(1.0) o d_fc1, composed host-side) in lanes [8,13).
    logits = jnp.dot(feat.astype(jnp.bfloat16), whead_ref[...],
                     preferred_element_type=jnp.float32) + bhead_ref[...]

    lane = jax.lax.broadcasted_iota(jnp.int32, logits.shape, 1)
    cls = _masked_softmax(logits, lane < CLASS_NUM)
    dom = _masked_softmax(logits, (lane >= DOM_OFF) & (lane < DOM_OFF + EVENT_NUM))
    out_ref[...] = cls + dom                             # disjoint lane groups


def cnn_fusion_forward(emb_masked, packed):
    """emb_masked: (B, L, E) f32 — embedded text already multiplied by the mask."""
    B, L, E = emb_masked.shape
    Lp = packed['valid_mask'].shape[0]                   # seq padded to multiple of 8

    # Build the lane-dense 4-tap window slab host-side: row (b,t) = x[b, t:t+4, :].
    x_pad = jnp.pad(emb_masked, ((0, 0), (0, Lp + MAX_K - 1 - L), (0, 0)))
    windows = jnp.concatenate([x_pad[:, j:j + Lp, :] for j in range(MAX_K)], axis=-1)
    windows = windows.astype(jnp.bfloat16)               # (B, Lp, 128) bf16

    # Batch block: multiple of 8 (no masked partial stores), capped by VMEM budget,
    # and >=2 grid steps when B is large so both v7x TensorCores get work.
    bb = max(8, min(MAX_BATCH_BLOCK, _round_up(pl.cdiv(B, 2), 8)))
    b_pad = _round_up(B, bb)
    if b_pad != B:
        windows = jnp.pad(windows, ((0, b_pad - B), (0, 0), (0, 0)))
    win_flat = windows.reshape(b_pad * Lp, LANES)
    grid = (b_pad // bb,)

    const2 = lambda i: (0, 0)
    in_specs = [
        pl.BlockSpec((bb * Lp, LANES), lambda i: (i, 0)),
        pl.BlockSpec(packed['valid_mask'].shape, const2),
        pl.BlockSpec(packed['conv_w'].shape, const2),
        pl.BlockSpec(packed['conv_b'].shape, const2),
        pl.BlockSpec(packed['fc1_w'].shape, const2),
        pl.BlockSpec(packed['fc1_b'].shape, const2),
        pl.BlockSpec(packed['head_w'].shape, const2),
        pl.BlockSpec(packed['head_b'].shape, const2),
    ]
    out_specs = pl.BlockSpec((bb, LANES), lambda i: (i, 0))
    out_shape = jax.ShapeDtypeStruct((b_pad, LANES), jnp.float32)

    probs = pl.pallas_call(
        cnn_fusion_kernel,
        grid=grid,
        in_specs=in_specs,
        out_specs=out_specs,
        out_shape=out_shape,
        compiler_params=pltpu.CompilerParams(
            dimension_semantics=("parallel",),
            vmem_limit_bytes=32 * 1024 * 1024),
    )(win_flat, packed['valid_mask'],
      packed['conv_w'], packed['conv_b'],
      packed['fc1_w'], packed['fc1_b'],
      packed['head_w'], packed['head_b'])

    # lane-dense slab -> real output widths (wrapper-side slice is layout glue)
    return probs[:B, :CLASS_NUM], probs[:B, DOM_OFF:DOM_OFF + EVENT_NUM]


# ---------------- parameter init (PyTorch-shaped) and host-side packing ------
def init_raw_params(key):
    keys = jax.random.split(key, 17)
    p = {}
    p['embed'] = 0.1 * jax.random.normal(keys[0], (VOCAB_SIZE, EMB_DIM), jnp.float32)
    p['conv_w'], p['conv_b'] = [], []
    for i, K in enumerate(WINDOW_SIZES):
        p['conv_w'].append(0.1 * jax.random.normal(keys[1 + i], (FILTER_NUM, 1, K, EMB_DIM), jnp.float32))
        p['conv_b'].append(0.01 * jax.random.normal(keys[5 + i], (FILTER_NUM,), jnp.float32))
    p['fc1_w'] = 0.1 * jax.random.normal(keys[9], (HIDDEN, NUM_WINDOWS * FILTER_NUM), jnp.float32)
    p['fc1_b'] = 0.01 * jax.random.normal(keys[10], (HIDDEN,), jnp.float32)
    p['cls_w'] = 0.1 * jax.random.normal(keys[11], (CLASS_NUM, HIDDEN), jnp.float32)
    p['cls_b'] = 0.01 * jax.random.normal(keys[12], (CLASS_NUM,), jnp.float32)
    p['d1_w'] = 0.1 * jax.random.normal(keys[13], (HIDDEN, HIDDEN), jnp.float32)
    p['d1_b'] = 0.01 * jax.random.normal(keys[14], (HIDDEN,), jnp.float32)
    p['d2_w'] = 0.1 * jax.random.normal(keys[15], (EVENT_NUM, HIDDEN), jnp.float32)
    p['d2_b'] = 0.01 * jax.random.normal(keys[16], (EVENT_NUM,), jnp.float32)
    return p


def pack_params(raw, seq_len):
    """Pack PyTorch-shaped weights into zero-padded, lane-aligned 128-lane slabs."""
    E, F, H = EMB_DIM, FILTER_NUM, HIDDEN
    Lp = _round_up(seq_len, 8)                 # padded seq len used by the kernel
    packed = {}

    wc = jnp.zeros((MAX_K * E, LANES), jnp.float32)
    bc = jnp.zeros((1, LANES), jnp.float32)
    vm = jnp.zeros((Lp, LANES), jnp.float32)
    for k, K in enumerate(WINDOW_SIZES):
        # Conv2d weight (F,1,K,E) -> (K*E, F) windowed-matmul block
        w_mat = jnp.transpose(raw['conv_w'][k].reshape(F, K * E))
        wc = wc.at[:K * E, F_PAD * k:F_PAD * k + F].set(w_mat)
        bc = bc.at[0, F_PAD * k:F_PAD * k + F].set(raw['conv_b'][k])
        vm = vm.at[:seq_len - K + 1, F_PAD * k:F_PAD * (k + 1)].set(1.0)
    packed['conv_w'] = wc.astype(jnp.bfloat16)
    packed['conv_b'] = bc
    packed['valid_mask'] = vm

    # fc1: Linear(80, H) -> rows remapped to the padded 128-lane pooled layout
    wfc = jnp.zeros((LANES, LANES), jnp.float32)
    fc1_w_in = jnp.transpose(raw['fc1_w'])                     # (80, H)
    for k in range(NUM_WINDOWS):
        wfc = wfc.at[F_PAD * k:F_PAD * k + F, :H].set(fc1_w_in[F * k:F * (k + 1), :])
    packed['fc1_w'] = wfc.astype(jnp.bfloat16)
    packed['fc1_b'] = jnp.zeros((1, LANES), jnp.float32).at[0, :H].set(raw['fc1_b'])

    # Fused head slab:
    #   class Linear(H,2)                       -> cols [0, 2)
    #   domain d_fc2 o LeakyReLU(1.0) o d_fc1   -> cols [DOM_OFF, DOM_OFF+5)
    # (negative_slope=True == 1.0 == identity, matching the PyTorch module bug-for-bug,
    #  so the two domain linears compose into a single (H,5) weight.)
    w_dom = raw['d1_w'].T @ raw['d2_w'].T                       # (H, EVENT_NUM)
    b_dom = raw['d1_b'] @ raw['d2_w'].T + raw['d2_b']           # (EVENT_NUM,)
    wh = jnp.zeros((LANES, LANES), jnp.float32)
    wh = wh.at[:H, :CLASS_NUM].set(jnp.transpose(raw['cls_w']))
    wh = wh.at[:H, DOM_OFF:DOM_OFF + EVENT_NUM].set(w_dom)
    bh = jnp.zeros((1, LANES), jnp.float32)
    bh = bh.at[0, :CLASS_NUM].set(raw['cls_b'])
    bh = bh.at[0, DOM_OFF:DOM_OFF + EVENT_NUM].set(b_dom)
    packed['head_w'] = wh.astype(jnp.bfloat16)
    packed['head_b'] = bh
    return packed


# ---------------- pure-JAX reference (unpacked f32 weights) for correctness --
def reference_forward(emb_masked, raw):
    B, L, _ = emb_masked.shape
    pooled = []
    for k, K in enumerate(WINDOW_SIZES):
        w_mat = raw['conv_w'][k].reshape(FILTER_NUM, K * EMB_DIM)        # (F, K*E)
        T = L - K + 1
        windows = jnp.stack([emb_masked[:, t:t + K, :].reshape(B, K * EMB_DIM)
                             for t in range(T)], axis=1)                 # (B, T, K*E)
        conv = jnp.maximum(jnp.einsum('btk,fk->btf', windows, w_mat) + raw['conv_b'][k], 0.0)
        pooled.append(jnp.max(conv, axis=1))
    feat = jnp.concatenate(pooled, axis=-1)
    feat = jnp.maximum(feat @ raw['fc1_w'].T + raw['fc1_b'], 0.0)
    cls = jax.nn.softmax(feat @ raw['cls_w'].T + raw['cls_b'], axis=-1)
    h = feat @ raw['d1_w'].T + raw['d1_b']          # LeakyReLU(slope=1.0) == identity
    dom = jax.nn.softmax(h @ raw['d2_w'].T + raw['d2_b'], axis=-1)
    return cls, dom


if __name__ == "__main__":
    key = jax.random.PRNGKey(0)
    kp, kt = jax.random.split(key)
    raw = init_raw_params(kp)
    packed = pack_params(raw, SEQ_LEN)

    # inputs: token ids (B, L) int32 and float mask (B, L)
    text_ids = jax.random.randint(kt, (BATCH, SEQ_LEN), 0, VOCAB_SIZE, dtype=jnp.int32)
    lengths = jnp.array([SEQ_LEN, SEQ_LEN - 2], dtype=jnp.int32)
    mask = (jnp.arange(SEQ_LEN)[None, :] < lengths[:, None]).astype(jnp.float32)

    # glue: embedding gather + mask (matches text = embed(text) * mask.unsqueeze(2))
    emb_masked = raw['embed'][text_ids] * mask[:, :, None]               # (B, L, E)

    class_out, domain_out = cnn_fusion_forward(emb_masked, packed)
    jax.block_until_ready((class_out, domain_out))

    assert class_out.shape == (BATCH, CLASS_NUM)
    assert domain_out.shape == (BATCH, EVENT_NUM)
    # exact-divide softmax: rows sum to 1 up to f32 rounding
    assert jnp.allclose(jnp.sum(class_out, axis=-1), 1.0, atol=1e-4)
    assert jnp.allclose(jnp.sum(domain_out, axis=-1), 1.0, atol=1e-4)

    # check the fused/packed bf16 kernel against the straightforward f32 reference
    cls_ref, dom_ref = reference_forward(emb_masked, raw)
    assert jnp.allclose(class_out, cls_ref, atol=5e-3), float(jnp.max(jnp.abs(class_out - cls_ref)))
    assert jnp.allclose(domain_out, dom_ref, atol=5e-3), float(jnp.max(jnp.abs(domain_out - dom_ref)))

    print("KERNEL_OK")
</pallas_src>

<mosaic_0001>
module attributes {stable_mosaic.version = 11 : i64} {
  func.func @cnn_fusion_kernel(%arg0: i32, %arg1: memref<64x128xbf16, #tpu.memory_space<vmem>>, %arg2: memref<8x128xf32, #tpu.memory_space<vmem>>, %arg3: memref<128x128xbf16, #tpu.memory_space<vmem>>, %arg4: memref<1x128xf32, #tpu.memory_space<vmem>>, %arg5: memref<128x128xbf16, #tpu.memory_space<vmem>>, %arg6: memref<1x128xf32, #tpu.memory_space<vmem>>, %arg7: memref<128x128xbf16, #tpu.memory_space<vmem>>, %arg8: memref<1x128xf32, #tpu.memory_space<vmem>>, %arg9: memref<8x128xf32, #tpu.memory_space<vmem>>) attributes {dimension_semantics = [#tpu.dimension_semantics<parallel>], iteration_bounds = array<i64: 1>, scalar_prefetch = 0 : i64, scratch_operands = 0 : i64, tpu.core_type = #tpu.core_type<tc>, window_params = [{transform_indices = @transform_0, window_bounds = array<i64: 64, 128>}, {pipeline_mode = #tpu.pipeline_mode<synchronous>, transform_indices = @transform_1, window_bounds = array<i64: 8, 128>}, {pipeline_mode = #tpu.pipeline_mode<synchronous>, transform_indices = @transform_2, window_bounds = array<i64: 128, 128>}, {pipeline_mode = #tpu.pipeline_mode<synchronous>, transform_indices = @transform_3, window_bounds = array<i64: 1, 128>}, {pipeline_mode = #tpu.pipeline_mode<synchronous>, transform_indices = @transform_4, window_bounds = array<i64: 128, 128>}, {pipeline_mode = #tpu.pipeline_mode<synchronous>, transform_indices = @transform_5, window_bounds = array<i64: 1, 128>}, {pipeline_mode = #tpu.pipeline_mode<synchronous>, transform_indices = @transform_6, window_bounds = array<i64: 128, 128>}, {pipeline_mode = #tpu.pipeline_mode<synchronous>, transform_indices = @transform_7, window_bounds = array<i64: 1, 128>}, {transform_indices = @transform_8, window_bounds = array<i64: 8, 128>}]} {
    %c0 = arith.constant 0 : index
    %c0_0 = arith.constant 0 : index
    %0 = vector.load %arg1[%c0, %c0_0] : memref<64x128xbf16, #tpu.memory_space<vmem>>, vector<64x128xbf16>
    %c0_1 = arith.constant 0 : index
    %c0_2 = arith.constant 0 : index
    %1 = vector.load %arg3[%c0_1, %c0_2] : memref<128x128xbf16, #tpu.memory_space<vmem>>, vector<128x128xbf16>
    %cst = arith.constant dense<0.000000e+00> : vector<64x128xf32>
    %2 = tpu.matmul %0, %1, %cst {dimension_numbers = #tpu.dot_dimension_numbers<[1], [0], [0], [1], [0, 0, 1, 1], [], []>} : vector<64x128xbf16>, vector<128x128xbf16>, vector<64x128xf32> -> vector<64x128xf32>
    %c0_3 = arith.constant 0 : index
    %c0_4 = arith.constant 0 : index
    %3 = vector.load %arg4[%c0_3, %c0_4] : memref<1x128xf32, #tpu.memory_space<vmem>>, vector<1x128xf32>
    %4 = vector.broadcast %3 : vector<1x128xf32> to vector<64x128xf32>
    %5 = arith.addf %2, %4 : vector<64x128xf32>
    %cst_5 = arith.constant 0.000000e+00 : f32
    %6 = vector.broadcast %cst_5 : f32 to vector<64x128xf32>
    %7 = arith.maximumf %5, %6 : vector<64x128xf32>
    %8 = vector.shape_cast %7 : vector<64x128xf32> to vector<8x8x128xf32>
    %c0_6 = arith.constant 0 : index
    %c0_7 = arith.constant 0 : index
    %9 = vector.load %arg2[%c0_6, %c0_7] : memref<8x128xf32, #tpu.memory_space<vmem>>, vector<8x128xf32>
    %10 = vector.shape_cast %9 : vector<8x128xf32> to vector<1x8x128xf32>
    %11 = vector.broadcast %10 : vector<1x8x128xf32> to vector<8x8x128xf32>
    %12 = arith.mulf %8, %11 : vector<8x8x128xf32>
    %cst_8 = arith.constant dense<0xFF800000> : vector<8x128xf32>
    %13 = vector.multi_reduction <maximumf>, %12, %cst_8 [1] : vector<8x8x128xf32> to vector<8x128xf32>
    %14 = arith.truncf %13 : vector<8x128xf32> to vector<8x128xbf16>
    %c0_9 = arith.constant 0 : index
    %c0_10 = arith.constant 0 : index
    %15 = vector.load %arg5[%c0_9, %c0_10] : memref<128x128xbf16, #tpu.memory_space<vmem>>, vector<128x128xbf16>
    %cst_11 = arith.constant dense<0.000000e+00> : vector<8x128xf32>
    %16 = tpu.matmul %14, %15, %cst_11 {dimension_numbers = #tpu.dot_dimension_numbers<[1], [0], [0], [1], [0, 0, 1, 1], [], []>} : vector<8x128xbf16>, vector<128x128xbf16>, vector<8x128xf32> -> vector<8x128xf32>
    %c0_12 = arith.constant 0 : index
    %c0_13 = arith.constant 0 : index
    %17 = vector.load %arg6[%c0_12, %c0_13] : memref<1x128xf32, #tpu.memory_space<vmem>>, vector<1x128xf32>
    %18 = vector.broadcast %17 : vector<1x128xf32> to vector<8x128xf32>
    %19 = arith.addf %16, %18 : vector<8x128xf32>
    %cst_14 = arith.constant 0.000000e+00 : f32
    %20 = vector.broadcast %cst_14 : f32 to vector<8x128xf32>
    %21 = arith.maximumf %19, %20 : vector<8x128xf32>
    %22 = arith.truncf %21 : vector<8x128xf32> to vector<8x128xbf16>
    %c0_15 = arith.constant 0 : index
    %c0_16 = arith.constant 0 : index
    %23 = vector.load %arg7[%c0_15, %c0_16] : memref<128x128xbf16, #tpu.memory_space<vmem>>, vector<128x128xbf16>
    %cst_17 = arith.constant dense<0.000000e+00> : vector<8x128xf32>
    %24 = tpu.matmul %22, %23, %cst_17 {dimension_numbers = #tpu.dot_dimension_numbers<[1], [0], [0], [1], [0, 0, 1, 1], [], []>} : vector<8x128xbf16>, vector<128x128xbf16>, vector<8x128xf32> -> vector<8x128xf32>
    %c0_18 = arith.constant 0 : index
    %c0_19 = arith.constant 0 : index
    %25 = vector.load %arg8[%c0_18, %c0_19] : memref<1x128xf32, #tpu.memory_space<vmem>>, vector<1x128xf32>
    %26 = vector.broadcast %25 : vector<1x128xf32> to vector<8x128xf32>
    %27 = arith.addf %24, %26 : vector<8x128xf32>
    %28 = tpu.iota {dimensions = array<i32: 1>} : vector<8x128xi32>
    %c2_i32 = arith.constant 2 : i32
    %29 = vector.broadcast %c2_i32 : i32 to vector<8x128xi32>
    %30 = arith.cmpi slt, %28, %29 : vector<8x128xi32>
    %cst_20 = arith.constant -1.000000e+30 : f32
    %31 = vector.broadcast %cst_20 : f32 to vector<8x128xf32>
    %32 = arith.select %30, %27, %31 : vector<8x128xi1>, vector<8x128xf32>
    %cst_21 = arith.constant dense<0xFF800000> : vector<8xf32>
    %33 = vector.multi_reduction <maximumf>, %32, %cst_21 [1] : vector<8x128xf32> to vector<8xf32>
    %34 = vector.shape_cast %33 : vector<8xf32> to vector<8x1xf32>
    %35 = vector.broadcast %34 : vector<8x1xf32> to vector<8x128xf32>
    %36 = arith.subf %32, %35 : vector<8x128xf32>
    %37 = math.exp %36 : vector<8x128xf32>
    %cst_22 = arith.constant dense<0.000000e+00> : vector<8xf32>
    %38 = vector.multi_reduction <add>, %37, %cst_22 [1] : vector<8x128xf32> to vector<8xf32>
    %39 = vector.shape_cast %38 : vector<8xf32> to vector<8x1xf32>
    %40 = vector.broadcast %39 : vector<8x1xf32> to vector<8x128xf32>
    %41 = arith.divf %37, %40 : vector<8x128xf32>
    %c8_i32 = arith.constant 8 : i32
    %42 = vector.broadcast %c8_i32 : i32 to vector<8x128xi32>
    %43 = arith.cmpi sge, %28, %42 : vector<8x128xi32>
    %c13_i32 = arith.constant 13 : i32
    %44 = vector.broadcast %c13_i32 : i32 to vector<8x128xi32>
    %45 = arith.cmpi slt, %28, %44 : vector<8x128xi32>
    %46 = arith.andi %43, %45 : vector<8x128xi1>
    %cst_23 = arith.constant -1.000000e+30 : f32
    %47 = vector.broadcast %cst_23 : f32 to vector<8x128xf32>
    %48 = arith.select %46, %27, %47 : vector<8x128xi1>, vector<8x128xf32>
    %cst_24 = arith.constant dense<0xFF800000> : vector<8xf32>
    %49 = vector.multi_reduction <maximumf>, %48, %cst_24 [1] : vector<8x128xf32> to vector<8xf32>
    %50 = vector.shape_cast %49 : vector<8xf32> to vector<8x1xf32>
    %51 = vector.broadcast %50 : vector<8x1xf32> to vector<8x128xf32>
    %52 = arith.subf %48, %51 : vector<8x128xf32>
    %53 = math.exp %52 : vector<8x128xf32>
    %cst_25 = arith.constant dense<0.000000e+00> : vector<8xf32>
    %54 = vector.multi_reduction <add>, %53, %cst_25 [1] : vector<8x128xf32> to vector<8xf32>
    %55 = vector.shape_cast %54 : vector<8xf32> to vector<8x1xf32>
    %56 = vector.broadcast %55 : vector<8x1xf32> to vector<8x128xf32>
    %57 = arith.divf %53, %56 : vector<8x128xf32>
    %58 = arith.addf %41, %57 : vector<8x128xf32>
    %c0_26 = arith.constant 0 : index
    %c0_27 = arith.constant 0 : index
    %59 = vector.load %arg9[%c0_26, %c0_27] : memref<8x128xf32, #tpu.memory_space<vmem>>, vector<8x128xf32>
    tpu.vector_store %arg9[%c0_26, %c0_27], %58 {strides = array<i32>} : memref<8x128xf32, #tpu.memory_space<vmem>>, vector<8x128xf32>,
    return
  }
  func.func @transform_0(%arg0: i32) -> (i32, i32) {
    %c0_i32 = arith.constant 0 : i32
    %c0_i32_0 = arith.constant 0 : i32
    return %arg0, %c0_i32 : i32, i32
  }
  func.func @transform_1(%arg0: i32) -> (i32, i32) {
    %c0_i32 = arith.constant 0 : i32
    %c0_i32_0 = arith.constant 0 : i32
    %c0_i32_1 = arith.constant 0 : i32
    return %c0_i32, %c0_i32_0 : i32, i32
  }
  func.func @transform_2(%arg0: i32) -> (i32, i32) {
    %c0_i32 = arith.constant 0 : i32
    %c0_i32_0 = arith.constant 0 : i32
    %c0_i32_1 = arith.constant 0 : i32
    return %c0_i32, %c0_i32_0 : i32, i32
  }
  func.func @transform_3(%arg0: i32) -> (i32, i32) {
    %c0_i32 = arith.constant 0 : i32
    %c0_i32_0 = arith.constant 0 : i32
    %c0_i32_1 = arith.constant 0 : i32
    return %c0_i32, %c0_i32_0 : i32, i32
  }
  func.func @transform_4(%arg0: i32) -> (i32, i32) {
    %c0_i32 = arith.constant 0 : i32
    %c0_i32_0 = arith.constant 0 : i32
    %c0_i32_1 = arith.constant 0 : i32
    return %c0_i32, %c0_i32_0 : i32, i32
  }
  func.func @transform_5(%arg0: i32) -> (i32, i32) {
    %c0_i32 = arith.constant 0 : i32
    %c0_i32_0 = arith.constant 0 : i32
    %c0_i32_1 = arith.constant 0 : i32
    return %c0_i32, %c0_i32_0 : i32, i32
  }
  func.func @transform_6(%arg0: i32) -> (i32, i32) {
    %c0_i32 = arith.constant 0 : i32
    %c0_i32_0 = arith.constant 0 : i32
    %c0_i32_1 = arith.constant 0 : i32
    return %c0_i32, %c0_i32_0 : i32, i32
  }
  func.func @transform_7(%arg0: i32) -> (i32, i32) {
    %c0_i32 = arith.constant 0 : i32
    %c0_i32_0 = arith.constant 0 : i32
    %c0_i32_1 = arith.constant 0 : i32
    return %c0_i32, %c0_i32_0 : i32, i32
  }
  func.func @transform_8(%arg0: i32) -> (i32, i32) {
    %c0_i32 = arith.constant 0 : i32
    %c0_i32_0 = arith.constant 0 : i32
    return %arg0, %c0_i32 : i32, i32
  }
}

</mosaic_0001>

<bundles_post_ra>
// kernel: tpu_custom_call.1
= control target key start
LH: loop header
LB: loop body
LE: loop exit
PB: predicated region body
PF: predicated region fallthrough
CT: control target
= control target key end

     0   :  { %13 = vsyncpa [#allocation3], 0  ;;  %s1116_s0 = inlined_call_operand.hbm [shape: bf16[64,128], index: 0, kind: input, shape index: {}]   ;;  %s1117_s1 = inlined_call_operand.hbm [shape: f32[8,128], index: 1, kind: input, shape index: {}]   ;;  %s1118_s2 = inlined_call_operand.hbm [shape: bf16[128,128], index: 2, kind: input, shape index: {}]   ;;  %s1119_s3 = inlined_call_operand.vmem [shape: f32[1,128], index: 3, kind: input, shape index: {}]   ;;  %s1120_s4 = inlined_call_operand.hbm [shape: bf16[128,128], index: 4, kind: input, shape index: {}]   ;;  %s1121_s5 = inlined_call_operand.vmem [shape: f32[1,128], index: 5, kind: input, shape index: {}]   ;;  %s1122_s6 = inlined_call_operand.hbm [shape: bf16[128,128], index: 6, kind: input, shape index: {}]   ;;  %s1123_s7 = inlined_call_operand.vmem [shape: f32[1,128], index: 7, kind: input, shape index: {}]   ;;  %s1124_s8 = inlined_call_operand.hbm [shape: f32[8,128], index: 8, kind: output, shape index: {}]  }
   0x1   :  { %14 = vsyncpa [#allocation6], 0 }
   0x2   :  { %15 = vsyncpa [#allocation9], 0 }
   0x3   :  { %16 = vsyncpa [#allocation4], 0  ;;  %s950_s27 = smov [#allocation5]   ;;  %s810_s9 = scalar_lea.hbm %s1117_s1, 128 }
   0x4   :  { %s35_s28 = sshll.u32 %s950_s27, 4  ;;  %p811_p0 = scmp.ne.s32.totalorder %s1117_s1, %s810_s9  ;;  %s36_s28 = int_to_ptr.vmem [resolvable:$true] %s35_s28 }
   0x5   :  { %p814_p1 = scmp.lt.u32.totalorder %s810_s9, %s1117_s1 }
   0x7   :  { %p816_p2 = pnand %p814_p1, %p811_p0 }
   0x9   :  { %819 = shalt.err (!%p816_p2)
}
   0xa   :  { %s820_s14 = scalar_lea.vmem %s36_s28, 128  ;;  %p825_p4 = scmp.lt.s32.totalorder %s36_s28, %s36_s28 }
   0xb   :  { %p821_p3 = scmp.ne.s32.totalorder %s36_s28, %s820_s14  ;;  %p826_p5 = scmp.lt.s32.totalorder %s820_s14, %s820_s14 }
   0xd   :  { %p827_p6 = por %p826_p5, %p825_p4 }
   0xf   :  { %p828_p7 = pnand %p827_p6, %p821_p3 }
  0x11   :  { %831 = shalt.err (!%p828_p7)
}
  0x12   :  { %38 = dma.hbm_to_vmem [thread:$0]  %s1117_s1, 128, %s36_s28, [#allocation6]  }
  0x13   :  { %s951_s17 = smov [#allocation8]   ;;  %s952_s19 = smov [#allocation2]  }
  0x14   :  { %s58_s18 = sshll.u32 %s951_s17, 4  ;;  %s22_s20 = sshll.u32 %s952_s19, 4  ;;  %s59_s18 = int_to_ptr.vmem [resolvable:$true] %s58_s18  ;;  %s23_s20 = int_to_ptr.vmem [resolvable:$true] %s22_s20 }
  0x15   :  { %s832_s23 = scalar_lea.hbm %s1120_s4, 1024 }
  0x16   :  { %p833_p8 = scmp.ne.s32.totalorder %s1120_s4, %s832_s23  ;;  %p836_p9 = scmp.lt.u32.totalorder %s832_s23, %s1120_s4 }
  0x18   :  { %p838_p10 = pnand %p836_p9, %p833_p8 }
  0x1a   :  { %841 = shalt.err (!%p838_p10)
}
  0x1b   :  { %s842_s1 = scalar_lea.vmem %s59_s18, 1024  ;;  %p847_p12 = scmp.lt.s32.totalorder %s59_s18, %s59_s18 }
  0x1c   :  { %p843_p11 = scmp.ne.s32.totalorder %s59_s18, %s842_s1  ;;  %p848_p13 = scmp.lt.s32.totalorder %s842_s1, %s842_s1 }
  0x1e   :  { %p849_p0 = por %p848_p13, %p847_p12 }
  0x20   :  { %p850_p1 = pnand %p849_p0, %p843_p11 }
  0x22   :  { %853 = shalt.err (!%p850_p1)
}
  0x23   :  { %s953_s28 = smov 64   ;;  %s954_s29 = smov 4  }
  0x24   :  { %64 = dma.hbm_to_vmem [thread:$0]  %s1120_s4, 1024, %s59_s18, [#allocation9], %s953_s28, %s953_s28, %s954_s29  }
  0x25   :  { %s854_s12 = scalar_lea.hbm %s1116_s0, 512 }
  0x26   :  { %p855_p2 = scmp.ne.s32.totalorder %s1116_s0, %s854_s12  ;;  %p858_p3 = scmp.lt.u32.totalorder %s854_s12, %s1116_s0 }
  0x28   :  { %p860_p4 = pnand %p858_p3, %p855_p2 }
  0x2a   :  { %863 = shalt.err (!%p860_p4)
}
  0x2b   :  { %s864_s17 = scalar_lea.vmem %s23_s20, 512  ;;  %p869_p6 = scmp.lt.s32.totalorder %s23_s20, %s23_s20 }
  0x2c   :  { %p865_p5 = scmp.ne.s32.totalorder %s23_s20, %s864_s17  ;;  %p870_p7 = scmp.lt.s32.totalorder %s864_s17, %s864_s17 }
  0x2e   :  { %p871_p8 = por %p870_p7, %p869_p6 }
  0x30   :  { %p872_p9 = pnand %p871_p8, %p865_p5 }
  0x32   :  { %875 = shalt.err (!%p872_p9)
}
  0x33   :  { %28 = dma.hbm_to_vmem [thread:$0]  %s1116_s0, 512, %s23_s20, [#allocation3], %s953_s28, %s953_s28, %s954_s29  }
  0x34   :  { %s955_s19 = smov [#allocation7]   ;;  %s956_s22 = smov [#allocation10]  }
  0x35   :  { %s44_s21 = sshll.u32 %s955_s19, 4  ;;  %s72_s23 = sshll.u32 %s956_s22, 4  ;;  %s45_s21 = int_to_ptr.vmem [resolvable:$true] %s44_s21  ;;  %s73_s23 = int_to_ptr.vmem [resolvable:$true] %s72_s23 }
  0x36   :  { %s876_s26 = scalar_lea.hbm %s1118_s2, 1024 }
  0x37   :  { %p877_p10 = scmp.ne.s32.totalorder %s1118_s2, %s876_s26  ;;  %p880_p11 = scmp.lt.u32.totalorder %s876_s26, %s1118_s2 }
  0x39   :  { %p882_p12 = pnand %p880_p11, %p877_p10 }
  0x3b   :  { %885 = shalt.err (!%p882_p12)
}
  0x3c   :  { %s886_s0 = scalar_lea.vmem %s45_s21, 1024  ;;  %p891_p0 = scmp.lt.s32.totalorder %s45_s21, %s45_s21 }
  0x3d   :  { %p887_p13 = scmp.ne.s32.totalorder %s45_s21, %s886_s0  ;;  %p892_p1 = scmp.lt.s32.totalorder %s886_s0, %s886_s0 }
  0x3f   :  { %p893_p2 = por %p892_p1, %p891_p0 }
  0x41   :  { %p894_p3 = pnand %p893_p2, %p887_p13 }
  0x43   :  { %897 = shalt.err (!%p894_p3)
}
  0x44   :  { %50 = dma.hbm_to_vmem [thread:$0]  %s1118_s2, 1024, %s45_s21, [#allocation6], %s953_s28, %s953_s28, %s954_s29  }
  0x45   :  { %s898_s13 = scalar_lea.hbm %s1122_s6, 1024 }
  0x46   :  { %p899_p4 = scmp.ne.s32.totalorder %s1122_s6, %s898_s13  ;;  %p902_p5 = scmp.lt.u32.totalorder %s898_s13, %s1122_s6 }
  0x48   :  { %p904_p6 = pnand %p902_p5, %p899_p4 }
  0x4a   :  { %907 = shalt.err (!%p904_p6)
}
  0x4b   :  { %s908_s4 = scalar_lea.vmem %s73_s23, 1024  ;;  %p913_p8 = scmp.lt.s32.totalorder %s73_s23, %s73_s23 }
  0x4c   :  { %p909_p7 = scmp.ne.s32.totalorder %s73_s23, %s908_s4  ;;  %p914_p9 = scmp.lt.s32.totalorder %s908_s4, %s908_s4 }
  0x4e   :  { %p915_p10 = por %p914_p9, %p913_p8 }
  0x50   :  { %p916_p11 = pnand %p915_p10, %p909_p7 }
  0x52   :  { %919 = shalt.err (!%p916_p11)
}
  0x53   :  { %78 = dma.hbm_to_vmem [thread:$0]  %s1122_s6, 1024, %s73_s23, [#allocation9], %s953_s28, %s953_s28, %s954_s29  }
  0x54   :  { %942 = dma.done.wait [#allocation3], 512  }
  0x55   :  { %943 = vsyncadd [#allocation3], 4294966784 }
  0x56   :  { %944 = dma.done.wait [#allocation6], 1152  }
  0x57   :  { %945 = vsyncadd [#allocation6], 4294966144 }
  0x58   :  { %946 = dma.done.wait [#allocation9], 2048  }
  0x59   :  { %947 = vsyncadd [#allocation9], 4294965248  ;;  %v774_v0 = vld [vmem:[#allocation7] sm:$0xff]   ;;  %v775_v1 = vld [vmem:[#allocation7 + $0x8] sm:$0xff]   ;;  %v957_v13 = vmov 0.0   ;;  %vm958_vm0 = vmmov 0  }
  0x5a   :  { %700 = vmatprep.subr.bf16.mxu0 %v774_v0  ;;  %v776_v2 = vld [vmem:[#allocation7 + $0x10] sm:$0xff]   ;;  %v777_v3 = vld [vmem:[#allocation7 + $0x18] sm:$0xff]   ;;  %v778_v5 = vld [vmem:[#allocation7 + $0x20] sm:$0xff]   ;;  %724 = vmatprep.subr.bf16.mxu1 %v957_v13  ;;  %vm377_vm1 = vcmask 1041409   ;;  %vm379_vm2 = vcmask 1042434   ;;  %vm381_vm3 = vcmask 1043459  }
  0x5b   :  { %701 = vmatpush3.bf16.msra.mxu0 %v774_v0  ;;  %v782_v4 = vld [vmem:[#allocation2] sm:$0xff]   ;;  %v779_v6 = vld [vmem:[#allocation7 + $0x28] sm:$0xff]   ;;  %v780_v7 = vld [vmem:[#allocation7 + $0x30] sm:$0xff]   ;;  %740 = vmatprep.mubr.msk.bf16.mxu1 %vm958_vm0, %v957_v13  ;;  %vm383_vm4 = vcmask 1044484   ;;  %vm385_vm5 = vcmask 1045509   ;;  %vm387_vm6 = vcmask 1046534  }
  0x5c   :  { %702 = vmatprep.subr.bf16.mxu0 %v775_v1  ;;  %716 = vmatprep.mubr.bf16.mxu0 %v782_v4  ;;  %v781_v8 = vld [vmem:[#allocation7 + $0x38] sm:$0xff]   ;;  %v783_v9 = vld [vmem:[#allocation2 + $0x8] sm:$0xff]   ;;  %v784_v10 = vld [vmem:[#allocation2 + $0x10] sm:$0xff]   ;;  %vm389_vm7 = vcmask 1047559  }
  0x5d   :  { %v785_v11 = vld [vmem:[#allocation2 + $0x18] sm:$0xff]   ;;  %v786_v12 = vld [vmem:[#allocation8] sm:$0xff]   ;;  %v787_v14 = vld [vmem:[#allocation8 + $0x8] sm:$0xff]  }
  0x5e   :  { %725 = vmatpush3.bf16.msra.mxu1 %v786_v12  ;;  %v788_v15 = vld [vmem:[#allocation8 + $0x10] sm:$0xff]   ;;  %v789_v16 = vld [vmem:[#allocation8 + $0x18] sm:$0xff]   ;;  %v790_v17 = vld [vmem:[#allocation8 + $0x20] sm:$0xff]  }
  0x5f   :  { %703 = vmatpush3.bf16.msra.mxu0 %v775_v1  ;;  %726 = vmatprep.subr.bf16.mxu1 %v957_v13  ;;  %v791_v18 = vld [vmem:[#allocation8 + $0x28] sm:$0xff]   ;;  %v792_v19 = vld [vmem:[#allocation8 + $0x30] sm:$0xff]   ;;  %v793_v20 = vld [vmem:[#allocation8 + $0x38] sm:$0xff]  }
  0x60   :  { %704 = vmatprep.subr.bf16.mxu0 %v776_v2  ;;  %v794_v21 = vld [vmem:[#allocation10] sm:$0xff]   ;;  %v795_v22 = vld [vmem:[#allocation10 + $0x8] sm:$0xff]   ;;  %v796_v23 = vld [vmem:[#allocation10 + $0x10] sm:$0xff]  }
  0x61   :  { %v797_v24 = vld [vmem:[#allocation10 + $0x18] sm:$0xff]   ;;  %v798_v25 = vld [vmem:[#allocation10 + $0x20] sm:$0xff]   ;;  %v799_v26 = vld [vmem:[#allocation10 + $0x28] sm:$0xff]  }
  0x62   :  { %727 = vmatpush3.bf16.msra.mxu1 %v787_v14  ;;  %v639_v27 = vld [vmem:[%s1119_s3] ss:$0 sm:$0xff] }
  0x63   :  { %705 = vmatpush3.bf16.msra.mxu0 %v776_v2  ;;  %728 = vmatprep.subr.bf16.mxu1 %v957_v13  ;;  %v273_v31 = vld [vmem:[#allocation5] sm:$0xff] }
  0x64   :  { %706 = vmatprep.subr.bf16.mxu0 %v777_v3 }
  0x66   :  { %729 = vmatpush3.bf16.msra.mxu1 %v788_v15 }
  0x67   :  { %707 = vmatpush3.bf16.msra.mxu0 %v777_v3  ;;  %730 = vmatprep.subr.bf16.mxu1 %v957_v13 }
  0x68   :  { %708 = vmatprep.subr.bf16.mxu0 %v778_v5 }
  0x6a   :  { %731 = vmatpush3.bf16.msra.mxu1 %v789_v16 }
  0x6b   :  { %709 = vmatpush3.bf16.msra.mxu0 %v778_v5  ;;  %732 = vmatprep.subr.bf16.mxu1 %v957_v13 }
  0x6c   :  { %710 = vmatprep.subr.bf16.mxu0 %v779_v6 }
  0x6e   :  { %733 = vmatpush3.bf16.msra.mxu1 %v790_v17 }
  0x6f   :  { %711 = vmatpush3.bf16.msra.mxu0 %v779_v6  ;;  %734 = vmatprep.subr.bf16.mxu1 %v957_v13 }
  0x70   :  { %712 = vmatprep.subr.bf16.mxu0 %v780_v7 }
  0x72   :  { %735 = vmatpush3.bf16.msra.mxu1 %v791_v18 }
  0x73   :  { %713 = vmatpush3.bf16.msra.mxu0 %v780_v7  ;;  %736 = vmatprep.subr.bf16.mxu1 %v957_v13 }
  0x74   :  { %714 = vmatprep.subr.bf16.mxu0 %v781_v8 }
  0x76   :  { %737 = vmatpush3.bf16.msra.mxu1 %v792_v19 }
  0x77   :  { %715 = vmatpush3.bf16.msra.mxu0 %v781_v8  ;;  %738 = vmatprep.subr.bf16.mxu1 %v957_v13 }
  0x78   :  { %744 = vmatprep.subr.bf16.mxu0 %v957_v13 }
  0x7a   :  { %717 = vmatmul.mubr.bf16.vlgmr.msra.gmra.mrb[0].mxu0 %v783_v9  ;;  %739 = vmatpush3.bf16.msra.mxu1 %v793_v20 }
  0x7b   :  { %720 = vmatprep.mubr.bf16.mxu0 %v784_v10  ;;  %745 = vmatpush3.bf16.msra.mxu0 %v794_v21 }
  0x7c   :  { %746 = vmatprep.subr.bf16.mxu0 %v957_v13 }
  0x7f   :  { %747 = vmatpush3.bf16.msra.mxu0 %v795_v22 }
  0x80   :  { %748 = vmatprep.subr.bf16.mxu0 %v957_v13 }
  0x82   :  { %721 = vmatmul.mubr.bf16.gmra.mrb[4].mxu0 %v785_v11 }
  0x83   :  { %760 = vmatprep.mubr.msk.bf16.mxu0 %vm958_vm0, %v957_v13  ;;  %749 = vmatpush3.bf16.msra.mxu0 %v796_v23 }
  0x84   :  { %750 = vmatprep.subr.bf16.mxu0 %v957_v13 }
  0x87   :  { %751 = vmatpush3.bf16.msra.mxu0 %v797_v24 }
  0x88   :  { %752 = vmatprep.subr.bf16.mxu0 %v957_v13 }
  0x8b   :  { %753 = vmatpush3.bf16.msra.mxu0 %v798_v25 }
  0x8c   :  { %754 = vmatprep.subr.bf16.mxu0 %v957_v13 }
  0x8f   :  { %755 = vmatpush3.bf16.msra.mxu0 %v799_v26 }
  0x90   :  { %756 = vmatprep.subr.bf16.mxu0 %v957_v13 }
 0x14d   :  { %v718_v28 = vpop.f32.mrb[0].mxu0 }
 0x14e   :  { %v243_v29 = vadd.f32 %v718_v28, %v639_v27  ;;  %v234_v30 = vpop.f32.mrb[1].mxu0 }
 0x14f   :  { %v235_v32 = vadd.f32 %v639_v27, %v234_v30  ;;  %v719_v33 = vpop.f32.mrb[2].mxu0 }
 0x150   :  { %v267_v34 = vmax.f32 %v243_v29, 0.0  ;;  %v246_v35 = vadd.f32 %v719_v33, %v639_v27  ;;  %v237_v36 = vpop.f32.mrb[3].mxu0 }
 0x151   :  { %v265_v37 = vmax.f32 %v235_v32, 0.0  ;;  %v238_v38 = vadd.f32 %v639_v27, %v237_v36 }
 0x152   :  { %v276_v39 = vmul.f32 %v273_v31, %v267_v34  ;;  %v268_v40 = vmax.f32 %v246_v35, 0.0 }
 0x153   :  { %v274_v41 = vmul.f32 %v273_v31, %v265_v37  ;;  %v266_v42 = vmax.f32 %v238_v38, 0.0 }
 0x154   :  { %v294_v43 = vrot.slane %v276_v39, 4  ;;  %v277_v44 = vmul.f32 %v273_v31, %v268_v40 }
 0x155   :  { %v282_v45 = vrot.slane %v274_v41, 4  ;;  %v275_v46 = vmul.f32 %v273_v31, %v266_v42  ;;  %v722_v47 = vpop.f32.mrb[4].mxu0 }
 0x156   :  { %v295_v48 = vmax.f32 %v276_v39, %v294_v43  ;;  %v300_v49 = vrot.slane %v277_v44, 4  ;;  %v259_v50 = vadd.f32 %v722_v47, %v639_v27  ;;  %v250_v51 = vpop.f32.mrb[5].mxu0 }
 0x157   :  { %v283_v52 = vmax.f32 %v274_v41, %v282_v45  ;;  %v288_v53 = vrot.slane %v275_v46, 4  ;;  %v251_v54 = vadd.f32 %v639_v27, %v250_v51  ;;  %v723_v55 = vpop.f32.mrb[6].mxu0 }
 0x158   :  { %v296_v56 = vrot.slane %v295_v48, 2  ;;  %v301_v57 = vmax.f32 %v277_v44, %v300_v49  ;;  %v271_v58 = vmax.f32 %v259_v50, 0.0  ;;  %v262_v59 = vadd.f32 %v723_v55, %v639_v27  ;;  %v253_v60 = vpop.f32.mrb[7].mxu0 }
 0x159   :  { %v284_v61 = vrot.slane %v283_v52, 2  ;;  %v289_v62 = vmax.f32 %v275_v46, %v288_v53  ;;  %v269_v63 = vmax.f32 %v251_v54, 0.0  ;;  %v254_v0 = vadd.f32 %v639_v27, %v253_v60 }
 0x15a   :  { %v297_v1 = vmax.f32 %v295_v48, %v296_v56  ;;  %v302_v2 = vrot.slane %v301_v57, 2  ;;  %v280_v3 = vmul.f32 %v273_v31, %v271_v58  ;;  %v272_v4 = vmax.f32 %v262_v59, 0.0 }
 0x15b   :  { %v285_v5 = vmax.f32 %v283_v52, %v284_v61  ;;  %v290_v6 = vrot.slane %v289_v62, 2  ;;  %v278_v7 = vmul.f32 %v273_v31, %v269_v63  ;;  %v270_v8 = vmax.f32 %v254_v0, 0.0 }
 0x15c   :  { %v298_v9 = vrot.slane %v297_v1, 1  ;;  %v303_v10 = vmax.f32 %v301_v57, %v302_v2  ;;  %v318_v11 = vrot.slane %v280_v3, 4  ;;  %v281_v12 = vmul.f32 %v273_v31, %v272_v4 }
 0x15d   :  { %v286_v14 = vrot.slane %v285_v5, 1  ;;  %v291_v15 = vmax.f32 %v289_v62, %v290_v6  ;;  %v306_v16 = vrot.slane %v278_v7, 4  ;;  %v279_v17 = vmul.f32 %v273_v31, %v270_v8  ;;  %v800_v6 = vld [vmem:[#allocation10 + $0x30] sm:$0xff]   ;;  %v652_v8 = vld [vmem:[%s1121_s5] ss:$0 sm:$0xff]  ;;  %s959_s5 = smov [#allocation11]  }
 0x15e   :  { %v299_v18 = vmax.f32 %v297_v1, %v298_v9  ;;  %v304_v19 = vrot.slane %v303_v10, 1  ;;  %v319_v20 = vmax.f32 %v280_v3, %v318_v11  ;;  %v324_v21 = vrot.slane %v281_v12, 4  ;;  %757 = vmatpush3.bf16.msra.mxu0 %v800_v6 }
 0x15f   :  { %v287_v22 = vmax.f32 %v285_v5, %v286_v14  ;;  %v292_v23 = vrot.slane %v291_v15, 1  ;;  %v307_v24 = vmax.f32 %v278_v7, %v306_v16  ;;  %v312_v25 = vrot.slane %v279_v17, 4  ;;  %758 = vmatprep.subr.bf16.mxu0 %v957_v13  ;;  %v801_v7 = vld [vmem:[#allocation10 + $0x38] sm:$0xff]  }
 0x160   :  { %v305_v26 = vmax.f32 %v303_v10, %v304_v19  ;;  %v320_v27 = vrot.slane %v319_v20, 2  ;;  %v325_v28 = vmax.f32 %v281_v12, %v324_v21  ;;  %v332_v34 = vpack.c.bf16 %v299_v18, %v299_v18  ;;  %v661_v13 = vld [vmem:[%s1123_s7] ss:$0 sm:$0xff]  ;;  %s628_s7 = sshll.u32 %s959_s5, 4  ;;  %s629_s7 = int_to_ptr.vmem [resolvable:$true] %s628_s7 }
 0x161   :  { %v330_v29 = vpack.c.bf16 %v287_v22, %v287_v22  ;;  %v293_v30 = vmax.f32 %v291_v15, %v292_v23  ;;  %v308_v32 = vrot.slane %v307_v24, 2  ;;  %v313_v33 = vmax.f32 %v279_v17, %v312_v25  ;;  %s920_s22 = scalar_lea.vmem %s629_s7, 128  ;;  %p925_p13 = scmp.lt.s32.totalorder %s629_s7, %s629_s7 }
 0x162   :  { %v321_v35 = vmax.f32 %v319_v20, %v320_v27  ;;  %v326_v36 = vrot.slane %v325_v28, 2  ;;  %v333_v37 = vpack.c.bf16 %v305_v26, %v305_v26  ;;  %v371_v46 = vunpack.c.l.b16 %v332_v34  ;;  %759 = vmatpush3.bf16.msra.mxu0 %v801_v7  ;;  %p921_p12 = scmp.ne.s32.totalorder %s629_s7, %s920_s22  ;;  %p926_p0 = scmp.lt.s32.totalorder %s920_s22, %s920_s22 }
 0x163   :  { %v331_v31 = vpack.c.bf16 %v293_v30, %v293_v30  ;;  %v309_v38 = vmax.f32 %v307_v24, %v308_v32  ;;  %v314_v39 = vrot.slane %v313_v33, 2  ;;  %v369_v42 = vunpack.c.l.b16 %v330_v29 }
 0x164   :  { %v322_v40 = vrot.slane %v321_v35, 1  ;;  %v327_v41 = vmax.f32 %v325_v28, %v326_v36  ;;  %v372_v49 = vunpack.c.l.b16 %v333_v37  ;;  %v594_v17 = vlaneseq  ;;  %p927_p1 = por %p926_p0, %p925_p13 }
 0x165   :  { %v370_v43 = vunpack.c.l.b16 %v331_v31  ;;  %v310_v44 = vrot.slane %v309_v38, 1  ;;  %v315_v45 = vmax.f32 %v313_v33, %v314_v39 }
 0x166   :  { %v323_v47 = vmax.f32 %v321_v35, %v322_v40  ;;  %v328_v48 = vrot.slane %v327_v41, 1  ;;  %v595_v18 = vand.u32 127, %v594_v17  ;;  %p928_p2 = pnand %p927_p1, %p921_p12 }
 0x167   :  { %v378_v50 = vsel %vm377_vm1, %v370_v43, %v369_v42  ;;  %v311_v51 = vmax.f32 %v309_v38, %v310_v44  ;;  %v316_v52 = vrot.slane %v315_v45, 1 }
 0x168   :  { %v329_v53 = vmax.f32 %v327_v41, %v328_v48  ;;  %v380_v54 = vsel %vm379_vm2, %v371_v46, %v378_v50  ;;  %v336_v58 = vpack.c.bf16 %v323_v47, %v323_v47  ;;  %vm596_vm8 = vcmp.lt.s32.totalorder %v595_v18, 2 }
 0x169   :  { %v334_v55 = vpack.c.bf16 %v311_v51, %v311_v51  ;;  %v317_v56 = vmax.f32 %v315_v45, %v316_v52  ;;  %v382_v57 = vsel %vm381_vm3, %v372_v49, %v380_v54  ;;  %vm607_vm9 = vcmp.ge.s32.totalorder %v595_v18, 8 }
 0x16a   :  { %v337_v61 = vpack.c.bf16 %v329_v53, %v329_v53  ;;  %v375_v0 = vunpack.c.l.b16 %v336_v58  ;;  %vm608_vm10 = vcmp.lt.s32.totalorder %v595_v18, 13 }
 0x16b   :  { %v373_v59 = vunpack.c.l.b16 %v334_v55  ;;  %v335_v60 = vpack.c.bf16 %v317_v56, %v317_v56  ;;  %vm609_vm11 = vmand %vm607_vm9, %vm608_vm10 }
 0x16c   :  { %v376_v1 = vunpack.c.l.b16 %v337_v61 }
 0x16d   :  { %v374_v62 = vunpack.c.l.b16 %v335_v60  ;;  %v384_v63 = vsel %vm383_vm4, %v373_v59, %v382_v57 }
 0x16f   :  { %v386_v2 = vsel %vm385_vm5, %v374_v62, %v384_v63 }
 0x170   :  { %v388_v3 = vsel %vm387_vm6, %v375_v0, %v386_v2 }
 0x171   :  { %v390_v4 = vsel %vm389_vm7, %v376_v1, %v388_v3 }
 0x172   :  { %v391_v5 = vpack.c.b16 %v390_v4, %v390_v4 }
 0x174   :  { %741 = vmatmul.mubr.bf16.vlgmr.msra.gmra.mrb[0].mxu1 %v391_v5 }
 0x247   :  { %v475_v9 = vpop.f32.mrb[0].mxu1 }
 0x248   :  { %v476_v10 = vadd.f32 %v652_v8, %v475_v9  ;;  %v742_v11 = vpop.f32.mrb[1].mxu1 }
 0x249   :  { %v478_v12 = vpop.f32.mrb[2].mxu1 }
 0x24a   :  { %v481_v14 = vmax.f32 %v476_v10, 0.0  ;;  %v743_v15 = vpop.f32.mrb[3].mxu1 }
 0x24c   :  { %v482_v16 = vpack.c.bf16 %v481_v14, %v481_v14 }
 0x24e   :  { %761 = vmatmul.mubr.bf16.vlgmr.msra.gmra.mrb[8].mxu0 %v482_v16 }
 0x321   :  { %v588_v19 = vpop.f32.mrb[8].mxu0 }
 0x322   :  { %v589_v20 = vadd.f32 %v661_v13, %v588_v19  ;;  %v762_v21 = vpop.f32.mrb[9].mxu0 }
 0x323   :  { %v591_v22 = vpop.f32.mrb[10].mxu0 }
 0x324   :  { %v763_v23 = vpop.f32.mrb[11].mxu0  ;;  %v597_v24 = vsel %vm596_vm8, %v589_v20, -1e+30  ;;  %v610_v25 = vsel %vm609_vm11, %v589_v20, -1e+30 }
 0x325   :  { %598 = vmax.xlane.f32.xlu0 %v597_v24 }
 0x329   :  { %611 = vmax.xlane.f32.xlu0 %v610_v25 }
 0x3b2   :  { %v599_v26 = vpop.xlane.xlu0 %598 }
 0x3b3   :  { %v600_v27 = vsub.f32 %v597_v24, %v599_v26 }
 0x3b5   :  { %v601_v28 = vmul.f32 1.442695, %v600_v27 }
 0x3b6   :  { %v612_v29 = vpop.xlane.xlu0 %611 }
 0x3b7   :  { %802 = vpow2.f32 %v601_v28  ;;  %v613_v30 = vsub.f32 %v610_v25, %v612_v29 }
 0x3b9   :  { %v614_v32 = vmul.f32 1.442695, %v613_v30 }
 0x3bb   :  { %804 = vpow2.f32 %v614_v32 }
 0x3c1   :  { %v803_v33 = vpop.eup %802 }
 0x3c2   :  { %603 = vadd.xlane.f32.xlu1 %v803_v33 }
 0x3c5   :  { %v805_v34 = vpop.eup %804 }
 0x3c6   :  { %616 = vadd.xlane.f32.xlu1 %v805_v34 }
 0x44f   :  { %v604_v35 = vpop.xlane.xlu1 %603 }
 0x450   :  { %806 = vrcp.f32 %v604_v35 }
 0x453   :  { %v617_v36 = vpop.xlane.xlu1 %616 }
 0x454   :  { %808 = vrcp.f32 %v617_v36 }
 0x45a   :  { %v807_v37 = vpop.eup %806 }
 0x45b   :  { %v606_v38 = vmul.f32 %v807_v37, %v803_v33 }
 0x45e   :  { %v809_v31 = vpop.eup %808 }
 0x45f   :  { %v619_v39 = vmul.f32 %v809_v31, %v805_v34 }
 0x461   :  { %v620_v40 = vadd.f32 %v619_v39, %v606_v38 }
 0x463   :  { %621 = vst [vmem:[#allocation11] sm:$0xff] %v620_v40 }
 0x464   :  { %931 = shalt.err (!%p928_p2)
}
 0x465   :  { %s932_s25 = scalar_lea.hbm %s1124_s8, 128 }
 0x466   :  { %p933_p3 = scmp.ne.s32.totalorder %s1124_s8, %s932_s25  ;;  %p936_p4 = scmp.lt.u32.totalorder %s932_s25, %s1124_s8 }
 0x468   :  { %p938_p5 = pnand %p936_p4, %p933_p3 }
 0x46a   :  { %941 = shalt.err (!%p938_p5)
}
 0x46b   :  { %631 = dma.vmem_to_hbm [thread:$0]  %s629_s7, 128, %s1124_s8, [#allocation4]  }
 0x46c   :  { %948 = dma.done.wait [#allocation4], 128  }
 0x46d   :  { %949 = vsyncadd [#allocation4], 4294967168 }
 0x46e   :  { %635 = vsyncpa [#allocation3], 1 }
 0x46f   :  { %636 = vsyncpa [#allocation6], 1 }
 0x470   :  { %637 = vsyncpa [#allocation9], 1 }
 0x471   :  { %638 = vsyncpa [#allocation4], 1 }

</bundles_post_ra>
